<compile_context>
chip_gen: v7x
topology: tpu7x:2x2x1
jax: 0.10.0
libtpu: 0.0.40
codegen_flags: <defaults>
</compile_context>

<pallas_src>
import functools

import jax
import jax.numpy as jnp
from jax.experimental import pallas as pl
from jax.experimental.pallas import tpu as pltpu


_SQRT_2_OVER_PI = 0.7978845608028654


def _gelu(x):
    # tanh-approximate GELU, used in BOTH the kernel and the reference.
    # TODO(synk): torch.nn.GELU() defaults to the exact erf form; lax.erf has no
    # Mosaic lowering, so we use the tanh approximation (max abs dev ~3e-4).
    return 0.5 * x * (1.0 + jnp.tanh(_SQRT_2_OVER_PI * (x + 0.044715 * x * x * x)))


def _res2net_kernel(x_ref, w_ref, m_ref, o_ref, *, scales, width, spatial_w, hw):
    """One batch element.

    x_ref : (C, HW)                     input, C = scales * width
    w_ref : (scales-1, width, 9*width)  tap-major conv weights (f32)
    m_ref : (9, HW)                     zero-padding border masks per tap
    o_ref : (C, HW)                     stacked outputs [out_0..out_{s-2}, spx_last]
    """
    masks = m_ref[...].astype(jnp.float32)   # (9, HW), hoisted (reused every stage)

    def shifted_taps(sp):
        # sp: (width, HW) -> (9*width, HW); rows [t*width:(t+1)*width] hold sp
        # shifted by (kh-1, kw-1) for tap t = kh*3 + kw, zero-padded at borders.
        pieces = []
        for t in range(9):
            dh, dw = t // 3 - 1, t % 3 - 1
            s = dh * spatial_w + dw                      # flat lane shift
            if s == 0:
                pieces.append(sp)
                continue
            # want rolled[p] == sp[(p + s) % hw]; jnp.roll semantics => shift = -s
            rolled = pltpu.roll(sp, (-s) % hw, axis=1)   # XLU lane rotation
            pieces.append(rolled * masks[t:t + 1, :])
        return jnp.concatenate(pieces, axis=0)

    sp = None
    for i in range(scales - 1):
        spx_i = x_ref[i * width:(i + 1) * width, :].astype(jnp.float32)
        sp = spx_i if i == 0 else sp + spx_i
        y = jnp.dot(w_ref[i], shifted_taps(sp),
                    preferred_element_type=jnp.float32)  # (width, HW) on the MXU
        sp = _gelu(y)
        o_ref[i * width:(i + 1) * width, :] = sp.astype(o_ref.dtype)

    # Last split passes through untouched.
    last = (scales - 1) * width
    o_ref[last:, :] = x_ref[last:, :]


def res2net_forward(x, conv_weights, *, scales):
    """Matches Res2Net(in_channels, scales, kernel_size=3).forward(x).

    x            : (B, C, H, W)  NCHW
    conv_weights : list of scales-1 arrays, each (width, width, 3, 3) (OIHW, no bias)
    returns      : list of `scales` arrays, each (B, width, H, W)
    """
    B, C, H, W = x.shape
    width = C // scales
    assert width * scales == C, "in_channels must be divisible by scales"
    assert len(conv_weights) == scales - 1
    hw = H * W

    # Free reshape (no transpose, no pad): spatial flattened onto the lane axis.
    x_flat = x.reshape(B, C, hw)

    # OIHW -> tap-major (co, (kh*3+kw)*width + ci): each stage conv becomes one
    # (width, 9*width) @ (9*width, HW) MXU matmul.
    w2 = jnp.stack(
        [jnp.transpose(w, (0, 2, 3, 1)).reshape(width, 9 * width)
         for w in conv_weights], axis=0).astype(jnp.float32)   # (scales-1, width, 9*width)

    # Border masks for the 9 taps over the flattened spatial axis.
    idx = jnp.arange(hw, dtype=jnp.int32)
    hh, ww = idx // W, idx % W
    rows = []
    for t in range(9):
        dh, dw = t // 3 - 1, t % 3 - 1
        valid = (hh + dh >= 0) & (hh + dh < H) & (ww + dw >= 0) & (ww + dw < W)
        rows.append(valid.astype(jnp.float32))
    masks = jnp.stack(rows, axis=0)                            # (9, HW)

    kernel = functools.partial(_res2net_kernel, scales=scales, width=width,
                               spatial_w=W, hw=hw)

    out_flat = pl.pallas_call(
        kernel,
        out_shape=jax.ShapeDtypeStruct((B, C, hw), x.dtype),
        grid_spec=pltpu.PrefetchScalarGridSpec(
            num_scalar_prefetch=0,
            grid=(B,),
            in_specs=[
                pl.BlockSpec((None, C, hw), lambda b: (b, 0, 0)),                  # x
                pl.BlockSpec((scales - 1, width, 9 * width), lambda b: (0, 0, 0)), # weights (resident)
                pl.BlockSpec((9, hw), lambda b: (0, 0)),                           # masks   (resident)
            ],
            out_specs=pl.BlockSpec((None, C, hw), lambda b: (b, 0, 0)),
        ),
        compiler_params=pltpu.CompilerParams(
            dimension_semantics=("parallel",),   # megacore sharding on v7x
            vmem_limit_bytes=32 * 1024 * 1024,   # explicit; lots of headroom
        ),
    )(x_flat, w2, masks)

    out = out_flat.reshape(B, C, H, W)           # free reshape back to NCHW
    return [out[:, i * width:(i + 1) * width] for i in range(scales)]


def _reference(x, conv_weights, *, scales):
    """Pure-JAX reference of Res2Net.forward (same tanh-GELU as the kernel)."""
    B, C, H, W = x.shape
    width = C // scales
    spx = [x[:, i * width:(i + 1) * width] for i in range(scales)]
    outs = []
    sp = None
    for i in range(scales - 1):
        inp = spx[0] if i == 0 else sp + spx[i]
        y = jax.lax.conv_general_dilated(
            inp.astype(jnp.float32), conv_weights[i].astype(jnp.float32),
            window_strides=(1, 1), padding="SAME",
            dimension_numbers=("NCHW", "OIHW", "NCHW"),
            precision=jax.lax.Precision.HIGHEST)
        sp = _gelu(y)
        outs.append(sp.astype(x.dtype))
    outs.append(spx[-1])
    return outs


if __name__ == "__main__":
    key = jax.random.PRNGKey(0)

    B, C, H, W = 2, 32, 16, 16
    scales = 4
    width = C // scales

    keys = jax.random.split(key, scales)  # 1 for x, scales-1 for conv weights
    x = jax.random.normal(keys[0], (B, C, H, W), dtype=jnp.float32)
    conv_weights = [
        0.2 * jax.random.normal(keys[1 + i], (width, width, 3, 3), jnp.float32)
        for i in range(scales - 1)
    ]

    outs = res2net_forward(x, conv_weights, scales=scales)
    outs = jax.block_until_ready(outs)
    refs = _reference(x, conv_weights, scales=scales)

    ok = (len(outs) == scales)
    for o, r in zip(outs, refs):
        err = float(jnp.max(jnp.abs(o.astype(jnp.float32) - r.astype(jnp.float32))))
        ok = ok and (o.shape == (B, width, H, W)) and (err < 5e-3)

    if ok:
        print("KERNEL_OK")
</pallas_src>

<mosaic_0001>
module attributes {stable_mosaic.version = 11 : i64} {
  func.func @_res2net_kernel(%arg0: i32, %arg1: memref<1x32x256xf32, #tpu.memory_space<vmem>>, %arg2: memref<3x8x72xf32, #tpu.memory_space<vmem>>, %arg3: memref<9x256xf32, #tpu.memory_space<vmem>>, %arg4: memref<1x32x256xf32, #tpu.memory_space<vmem>>) attributes {dimension_semantics = [#tpu.dimension_semantics<parallel>], iteration_bounds = array<i64: 2>, scalar_prefetch = 0 : i64, scratch_operands = 0 : i64, tpu.core_type = #tpu.core_type<tc>, window_params = [{transform_indices = @transform_0, window_bounds = array<i64: 1, 32, 256>}, {pipeline_mode = #tpu.pipeline_mode<synchronous>, transform_indices = @transform_1, window_bounds = array<i64: 3, 8, 72>}, {pipeline_mode = #tpu.pipeline_mode<synchronous>, transform_indices = @transform_2, window_bounds = array<i64: 9, 256>}, {transform_indices = @transform_3, window_bounds = array<i64: 1, 32, 256>}]} {
    %c0 = arith.constant 0 : index
    %c0_0 = arith.constant 0 : index
    %0 = vector.load %arg3[%c0, %c0_0] : memref<9x256xf32, #tpu.memory_space<vmem>>, vector<9x256xf32>
    %c0_1 = arith.constant 0 : index
    %c0_2 = arith.constant 0 : index
    %c0_3 = arith.constant 0 : index
    %1 = vector.load %arg1[%c0_1, %c0_2, %c0_3] : memref<1x32x256xf32, #tpu.memory_space<vmem>>, vector<1x8x256xf32>
    %2 = vector.shape_cast %1 : vector<1x8x256xf32> to vector<8x256xf32>
    %c0_4 = arith.constant 0 : index
    %c0_5 = arith.constant 0 : index
    %c0_6 = arith.constant 0 : index
    %3 = vector.load %arg2[%c0_4, %c0_5, %c0_6] : memref<3x8x72xf32, #tpu.memory_space<vmem>>, vector<1x8x72xf32>
    %4 = vector.shape_cast %3 : vector<1x8x72xf32> to vector<8x72xf32>
    %c17_i32 = arith.constant 17 : i32
    %5 = tpu.dynamic_rotate %2 by %c17_i32 dim 1 : vector<8x256xf32>, i32 -> vector<8x256xf32>
    %6 = vector.extract_strided_slice %0 {offsets = [0, 0], sizes = [1, 256], strides = [1, 1]} : vector<9x256xf32> to vector<1x256xf32>
    %7 = vector.broadcast %6 : vector<1x256xf32> to vector<8x256xf32>
    %8 = arith.mulf %5, %7 : vector<8x256xf32>
    %c16_i32 = arith.constant 16 : i32
    %9 = tpu.dynamic_rotate %2 by %c16_i32 dim 1 : vector<8x256xf32>, i32 -> vector<8x256xf32>
    %10 = vector.extract_strided_slice %0 {offsets = [1, 0], sizes = [1, 256], strides = [1, 1]} : vector<9x256xf32> to vector<1x256xf32>
    %11 = vector.broadcast %10 : vector<1x256xf32> to vector<8x256xf32>
    %12 = arith.mulf %9, %11 : vector<8x256xf32>
    %c15_i32 = arith.constant 15 : i32
    %13 = tpu.dynamic_rotate %2 by %c15_i32 dim 1 : vector<8x256xf32>, i32 -> vector<8x256xf32>
    %14 = vector.extract_strided_slice %0 {offsets = [2, 0], sizes = [1, 256], strides = [1, 1]} : vector<9x256xf32> to vector<1x256xf32>
    %15 = vector.broadcast %14 : vector<1x256xf32> to vector<8x256xf32>
    %16 = arith.mulf %13, %15 : vector<8x256xf32>
    %c1_i32 = arith.constant 1 : i32
    %17 = tpu.dynamic_rotate %2 by %c1_i32 dim 1 : vector<8x256xf32>, i32 -> vector<8x256xf32>
    %18 = vector.extract_strided_slice %0 {offsets = [3, 0], sizes = [1, 256], strides = [1, 1]} : vector<9x256xf32> to vector<1x256xf32>
    %19 = vector.broadcast %18 : vector<1x256xf32> to vector<8x256xf32>
    %20 = arith.mulf %17, %19 : vector<8x256xf32>
    %c255_i32 = arith.constant 255 : i32
    %21 = tpu.dynamic_rotate %2 by %c255_i32 dim 1 : vector<8x256xf32>, i32 -> vector<8x256xf32>
    %22 = vector.extract_strided_slice %0 {offsets = [5, 0], sizes = [1, 256], strides = [1, 1]} : vector<9x256xf32> to vector<1x256xf32>
    %23 = vector.broadcast %22 : vector<1x256xf32> to vector<8x256xf32>
    %24 = arith.mulf %21, %23 : vector<8x256xf32>
    %c241_i32 = arith.constant 241 : i32
    %25 = tpu.dynamic_rotate %2 by %c241_i32 dim 1 : vector<8x256xf32>, i32 -> vector<8x256xf32>
    %26 = vector.extract_strided_slice %0 {offsets = [6, 0], sizes = [1, 256], strides = [1, 1]} : vector<9x256xf32> to vector<1x256xf32>
    %27 = vector.broadcast %26 : vector<1x256xf32> to vector<8x256xf32>
    %28 = arith.mulf %25, %27 : vector<8x256xf32>
    %c240_i32 = arith.constant 240 : i32
    %29 = tpu.dynamic_rotate %2 by %c240_i32 dim 1 : vector<8x256xf32>, i32 -> vector<8x256xf32>
    %30 = vector.extract_strided_slice %0 {offsets = [7, 0], sizes = [1, 256], strides = [1, 1]} : vector<9x256xf32> to vector<1x256xf32>
    %31 = vector.broadcast %30 : vector<1x256xf32> to vector<8x256xf32>
    %32 = arith.mulf %29, %31 : vector<8x256xf32>
    %c239_i32 = arith.constant 239 : i32
    %33 = tpu.dynamic_rotate %2 by %c239_i32 dim 1 : vector<8x256xf32>, i32 -> vector<8x256xf32>
    %34 = vector.extract_strided_slice %0 {offsets = [8, 0], sizes = [1, 256], strides = [1, 1]} : vector<9x256xf32> to vector<1x256xf32>
    %35 = vector.broadcast %34 : vector<1x256xf32> to vector<8x256xf32>
    %36 = arith.mulf %33, %35 : vector<8x256xf32>
    %37 = tpu.concatenate %8, %12, %16, %20, %2, %24, %28, %32, %36 in 0 : vector<8x256xf32>, vector<8x256xf32>, vector<8x256xf32>, vector<8x256xf32>, vector<8x256xf32>, vector<8x256xf32>, vector<8x256xf32>, vector<8x256xf32>, vector<8x256xf32> -> vector<72x256xf32>
    %cst = arith.constant dense<0.000000e+00> : vector<8x256xf32>
    %38 = tpu.matmul %4, %37, %cst {dimension_numbers = #tpu.dot_dimension_numbers<[1], [0], [0], [1], [0, 0, 1, 1], [], []>} : vector<8x72xf32>, vector<72x256xf32>, vector<8x256xf32> -> vector<8x256xf32>
    %cst_7 = arith.constant 5.000000e-01 : f32
    %39 = vector.broadcast %cst_7 : f32 to vector<8x256xf32>
    %40 = arith.mulf %39, %38 : vector<8x256xf32>
    %cst_8 = arith.constant 4.471500e-02 : f32
    %41 = vector.broadcast %cst_8 : f32 to vector<8x256xf32>
    %42 = arith.mulf %41, %38 : vector<8x256xf32>
    %43 = arith.mulf %42, %38 : vector<8x256xf32>
    %44 = arith.mulf %43, %38 : vector<8x256xf32>
    %45 = arith.addf %38, %44 : vector<8x256xf32>
    %cst_9 = arith.constant 0.797884583 : f32
    %46 = vector.broadcast %cst_9 : f32 to vector<8x256xf32>
    %47 = arith.mulf %46, %45 : vector<8x256xf32>
    %48 = math.tanh %47 : vector<8x256xf32>
    %cst_10 = arith.constant 1.000000e+00 : f32
    %49 = vector.broadcast %cst_10 : f32 to vector<8x256xf32>
    %50 = arith.addf %49, %48 : vector<8x256xf32>
    %51 = arith.mulf %40, %50 : vector<8x256xf32>
    %c0_11 = arith.constant 0 : index
    %c0_12 = arith.constant 0 : index
    %c0_13 = arith.constant 0 : index
    %52 = vector.load %arg4[%c0_11, %c0_12, %c0_13] : memref<1x32x256xf32, #tpu.memory_space<vmem>>, vector<1x8x256xf32>
    %53 = vector.shape_cast %52 : vector<1x8x256xf32> to vector<8x256xf32>
    %54 = vector.shape_cast %51 : vector<8x256xf32> to vector<1x8x256xf32>
    tpu.vector_store %arg4[%c0_11, %c0_12, %c0_13], %54 {strides = array<i32>} : memref<1x32x256xf32, #tpu.memory_space<vmem>>, vector<1x8x256xf32>,
    %c0_14 = arith.constant 0 : index
    %c8 = arith.constant 8 : index
    %c0_15 = arith.constant 0 : index
    %55 = vector.load %arg1[%c0_14, %c8, %c0_15] : memref<1x32x256xf32, #tpu.memory_space<vmem>>, vector<1x8x256xf32>
    %56 = vector.shape_cast %55 : vector<1x8x256xf32> to vector<8x256xf32>
    %57 = arith.addf %51, %56 : vector<8x256xf32>
    %c1 = arith.constant 1 : index
    %c0_16 = arith.constant 0 : index
    %c0_17 = arith.constant 0 : index
    %58 = vector.load %arg2[%c1, %c0_16, %c0_17] : memref<3x8x72xf32, #tpu.memory_space<vmem>>, vector<1x8x72xf32>
    %59 = vector.shape_cast %58 : vector<1x8x72xf32> to vector<8x72xf32>
    %c17_i32_18 = arith.constant 17 : i32
    %60 = tpu.dynamic_rotate %57 by %c17_i32_18 dim 1 : vector<8x256xf32>, i32 -> vector<8x256xf32>
    %61 = vector.extract_strided_slice %0 {offsets = [0, 0], sizes = [1, 256], strides = [1, 1]} : vector<9x256xf32> to vector<1x256xf32>
    %62 = vector.broadcast %61 : vector<1x256xf32> to vector<8x256xf32>
    %63 = arith.mulf %60, %62 : vector<8x256xf32>
    %c16_i32_19 = arith.constant 16 : i32
    %64 = tpu.dynamic_rotate %57 by %c16_i32_19 dim 1 : vector<8x256xf32>, i32 -> vector<8x256xf32>
    %65 = vector.extract_strided_slice %0 {offsets = [1, 0], sizes = [1, 256], strides = [1, 1]} : vector<9x256xf32> to vector<1x256xf32>
    %66 = vector.broadcast %65 : vector<1x256xf32> to vector<8x256xf32>
    %67 = arith.mulf %64, %66 : vector<8x256xf32>
    %c15_i32_20 = arith.constant 15 : i32
    %68 = tpu.dynamic_rotate %57 by %c15_i32_20 dim 1 : vector<8x256xf32>, i32 -> vector<8x256xf32>
    %69 = vector.extract_strided_slice %0 {offsets = [2, 0], sizes = [1, 256], strides = [1, 1]} : vector<9x256xf32> to vector<1x256xf32>
    %70 = vector.broadcast %69 : vector<1x256xf32> to vector<8x256xf32>
    %71 = arith.mulf %68, %70 : vector<8x256xf32>
    %c1_i32_21 = arith.constant 1 : i32
    %72 = tpu.dynamic_rotate %57 by %c1_i32_21 dim 1 : vector<8x256xf32>, i32 -> vector<8x256xf32>
    %73 = vector.extract_strided_slice %0 {offsets = [3, 0], sizes = [1, 256], strides = [1, 1]} : vector<9x256xf32> to vector<1x256xf32>
    %74 = vector.broadcast %73 : vector<1x256xf32> to vector<8x256xf32>
    %75 = arith.mulf %72, %74 : vector<8x256xf32>
    %c255_i32_22 = arith.constant 255 : i32
    %76 = tpu.dynamic_rotate %57 by %c255_i32_22 dim 1 : vector<8x256xf32>, i32 -> vector<8x256xf32>
    %77 = vector.extract_strided_slice %0 {offsets = [5, 0], sizes = [1, 256], strides = [1, 1]} : vector<9x256xf32> to vector<1x256xf32>
    %78 = vector.broadcast %77 : vector<1x256xf32> to vector<8x256xf32>
    %79 = arith.mulf %76, %78 : vector<8x256xf32>
    %c241_i32_23 = arith.constant 241 : i32
    %80 = tpu.dynamic_rotate %57 by %c241_i32_23 dim 1 : vector<8x256xf32>, i32 -> vector<8x256xf32>
    %81 = vector.extract_strided_slice %0 {offsets = [6, 0], sizes = [1, 256], strides = [1, 1]} : vector<9x256xf32> to vector<1x256xf32>
    %82 = vector.broadcast %81 : vector<1x256xf32> to vector<8x256xf32>
    %83 = arith.mulf %80, %82 : vector<8x256xf32>
    %c240_i32_24 = arith.constant 240 : i32
    %84 = tpu.dynamic_rotate %57 by %c240_i32_24 dim 1 : vector<8x256xf32>, i32 -> vector<8x256xf32>
    %85 = vector.extract_strided_slice %0 {offsets = [7, 0], sizes = [1, 256], strides = [1, 1]} : vector<9x256xf32> to vector<1x256xf32>
    %86 = vector.broadcast %85 : vector<1x256xf32> to vector<8x256xf32>
    %87 = arith.mulf %84, %86 : vector<8x256xf32>
    %c239_i32_25 = arith.constant 239 : i32
    %88 = tpu.dynamic_rotate %57 by %c239_i32_25 dim 1 : vector<8x256xf32>, i32 -> vector<8x256xf32>
    %89 = vector.extract_strided_slice %0 {offsets = [8, 0], sizes = [1, 256], strides = [1, 1]} : vector<9x256xf32> to vector<1x256xf32>
    %90 = vector.broadcast %89 : vector<1x256xf32> to vector<8x256xf32>
    %91 = arith.mulf %88, %90 : vector<8x256xf32>
    %92 = tpu.concatenate %63, %67, %71, %75, %57, %79, %83, %87, %91 in 0 : vector<8x256xf32>, vector<8x256xf32>, vector<8x256xf32>, vector<8x256xf32>, vector<8x256xf32>, vector<8x256xf32>, vector<8x256xf32>, vector<8x256xf32>, vector<8x256xf32> -> vector<72x256xf32>
    %cst_26 = arith.constant dense<0.000000e+00> : vector<8x256xf32>
    %93 = tpu.matmul %59, %92, %cst_26 {dimension_numbers = #tpu.dot_dimension_numbers<[1], [0], [0], [1], [0, 0, 1, 1], [], []>} : vector<8x72xf32>, vector<72x256xf32>, vector<8x256xf32> -> vector<8x256xf32>
    %cst_27 = arith.constant 5.000000e-01 : f32
    %94 = vector.broadcast %cst_27 : f32 to vector<8x256xf32>
    %95 = arith.mulf %94, %93 : vector<8x256xf32>
    %cst_28 = arith.constant 4.471500e-02 : f32
    %96 = vector.broadcast %cst_28 : f32 to vector<8x256xf32>
    %97 = arith.mulf %96, %93 : vector<8x256xf32>
    %98 = arith.mulf %97, %93 : vector<8x256xf32>
    %99 = arith.mulf %98, %93 : vector<8x256xf32>
    %100 = arith.addf %93, %99 : vector<8x256xf32>
    %cst_29 = arith.constant 0.797884583 : f32
    %101 = vector.broadcast %cst_29 : f32 to vector<8x256xf32>
    %102 = arith.mulf %101, %100 : vector<8x256xf32>
    %103 = math.tanh %102 : vector<8x256xf32>
    %cst_30 = arith.constant 1.000000e+00 : f32
    %104 = vector.broadcast %cst_30 : f32 to vector<8x256xf32>
    %105 = arith.addf %104, %103 : vector<8x256xf32>
    %106 = arith.mulf %95, %105 : vector<8x256xf32>
    %c0_31 = arith.constant 0 : index
    %c8_32 = arith.constant 8 : index
    %c0_33 = arith.constant 0 : index
    %107 = vector.load %arg4[%c0_31, %c8_32, %c0_33] : memref<1x32x256xf32, #tpu.memory_space<vmem>>, vector<1x8x256xf32>
    %108 = vector.shape_cast %107 : vector<1x8x256xf32> to vector<8x256xf32>
    %109 = vector.shape_cast %106 : vector<8x256xf32> to vector<1x8x256xf32>
    tpu.vector_store %arg4[%c0_31, %c8_32, %c0_33], %109 {strides = array<i32>} : memref<1x32x256xf32, #tpu.memory_space<vmem>>, vector<1x8x256xf32>,
    %c0_34 = arith.constant 0 : index
    %c16 = arith.constant 16 : index
    %c0_35 = arith.constant 0 : index
    %110 = vector.load %arg1[%c0_34, %c16, %c0_35] : memref<1x32x256xf32, #tpu.memory_space<vmem>>, vector<1x8x256xf32>
    %111 = vector.shape_cast %110 : vector<1x8x256xf32> to vector<8x256xf32>
    %112 = arith.addf %106, %111 : vector<8x256xf32>
    %c2 = arith.constant 2 : index
    %c0_36 = arith.constant 0 : index
    %c0_37 = arith.constant 0 : index
    %113 = vector.load %arg2[%c2, %c0_36, %c0_37] : memref<3x8x72xf32, #tpu.memory_space<vmem>>, vector<1x8x72xf32>
    %114 = vector.shape_cast %113 : vector<1x8x72xf32> to vector<8x72xf32>
    %c17_i32_38 = arith.constant 17 : i32
    %115 = tpu.dynamic_rotate %112 by %c17_i32_38 dim 1 : vector<8x256xf32>, i32 -> vector<8x256xf32>
    %116 = vector.extract_strided_slice %0 {offsets = [0, 0], sizes = [1, 256], strides = [1, 1]} : vector<9x256xf32> to vector<1x256xf32>
    %117 = vector.broadcast %116 : vector<1x256xf32> to vector<8x256xf32>
    %118 = arith.mulf %115, %117 : vector<8x256xf32>
    %c16_i32_39 = arith.constant 16 : i32
    %119 = tpu.dynamic_rotate %112 by %c16_i32_39 dim 1 : vector<8x256xf32>, i32 -> vector<8x256xf32>
    %120 = vector.extract_strided_slice %0 {offsets = [1, 0], sizes = [1, 256], strides = [1, 1]} : vector<9x256xf32> to vector<1x256xf32>
    %121 = vector.broadcast %120 : vector<1x256xf32> to vector<8x256xf32>
    %122 = arith.mulf %119, %121 : vector<8x256xf32>
    %c15_i32_40 = arith.constant 15 : i32
    %123 = tpu.dynamic_rotate %112 by %c15_i32_40 dim 1 : vector<8x256xf32>, i32 -> vector<8x256xf32>
    %124 = vector.extract_strided_slice %0 {offsets = [2, 0], sizes = [1, 256], strides = [1, 1]} : vector<9x256xf32> to vector<1x256xf32>
    %125 = vector.broadcast %124 : vector<1x256xf32> to vector<8x256xf32>
    %126 = arith.mulf %123, %125 : vector<8x256xf32>
    %c1_i32_41 = arith.constant 1 : i32
    %127 = tpu.dynamic_rotate %112 by %c1_i32_41 dim 1 : vector<8x256xf32>, i32 -> vector<8x256xf32>
    %128 = vector.extract_strided_slice %0 {offsets = [3, 0], sizes = [1, 256], strides = [1, 1]} : vector<9x256xf32> to vector<1x256xf32>
    %129 = vector.broadcast %128 : vector<1x256xf32> to vector<8x256xf32>
    %130 = arith.mulf %127, %129 : vector<8x256xf32>
    %c255_i32_42 = arith.constant 255 : i32
    %131 = tpu.dynamic_rotate %112 by %c255_i32_42 dim 1 : vector<8x256xf32>, i32 -> vector<8x256xf32>
    %132 = vector.extract_strided_slice %0 {offsets = [5, 0], sizes = [1, 256], strides = [1, 1]} : vector<9x256xf32> to vector<1x256xf32>
    %133 = vector.broadcast %132 : vector<1x256xf32> to vector<8x256xf32>
    %134 = arith.mulf %131, %133 : vector<8x256xf32>
    %c241_i32_43 = arith.constant 241 : i32
    %135 = tpu.dynamic_rotate %112 by %c241_i32_43 dim 1 : vector<8x256xf32>, i32 -> vector<8x256xf32>
    %136 = vector.extract_strided_slice %0 {offsets = [6, 0], sizes = [1, 256], strides = [1, 1]} : vector<9x256xf32> to vector<1x256xf32>
    %137 = vector.broadcast %136 : vector<1x256xf32> to vector<8x256xf32>
    %138 = arith.mulf %135, %137 : vector<8x256xf32>
    %c240_i32_44 = arith.constant 240 : i32
    %139 = tpu.dynamic_rotate %112 by %c240_i32_44 dim 1 : vector<8x256xf32>, i32 -> vector<8x256xf32>
    %140 = vector.extract_strided_slice %0 {offsets = [7, 0], sizes = [1, 256], strides = [1, 1]} : vector<9x256xf32> to vector<1x256xf32>
    %141 = vector.broadcast %140 : vector<1x256xf32> to vector<8x256xf32>
    %142 = arith.mulf %139, %141 : vector<8x256xf32>
    %c239_i32_45 = arith.constant 239 : i32
    %143 = tpu.dynamic_rotate %112 by %c239_i32_45 dim 1 : vector<8x256xf32>, i32 -> vector<8x256xf32>
    %144 = vector.extract_strided_slice %0 {offsets = [8, 0], sizes = [1, 256], strides = [1, 1]} : vector<9x256xf32> to vector<1x256xf32>
    %145 = vector.broadcast %144 : vector<1x256xf32> to vector<8x256xf32>
    %146 = arith.mulf %143, %145 : vector<8x256xf32>
    %147 = tpu.concatenate %118, %122, %126, %130, %112, %134, %138, %142, %146 in 0 : vector<8x256xf32>, vector<8x256xf32>, vector<8x256xf32>, vector<8x256xf32>, vector<8x256xf32>, vector<8x256xf32>, vector<8x256xf32>, vector<8x256xf32>, vector<8x256xf32> -> vector<72x256xf32>
    %cst_46 = arith.constant dense<0.000000e+00> : vector<8x256xf32>
    %148 = tpu.matmul %114, %147, %cst_46 {dimension_numbers = #tpu.dot_dimension_numbers<[1], [0], [0], [1], [0, 0, 1, 1], [], []>} : vector<8x72xf32>, vector<72x256xf32>, vector<8x256xf32> -> vector<8x256xf32>
    %cst_47 = arith.constant 5.000000e-01 : f32
    %149 = vector.broadcast %cst_47 : f32 to vector<8x256xf32>
    %150 = arith.mulf %149, %148 : vector<8x256xf32>
    %cst_48 = arith.constant 4.471500e-02 : f32
    %151 = vector.broadcast %cst_48 : f32 to vector<8x256xf32>
    %152 = arith.mulf %151, %148 : vector<8x256xf32>
    %153 = arith.mulf %152, %148 : vector<8x256xf32>
    %154 = arith.mulf %153, %148 : vector<8x256xf32>
    %155 = arith.addf %148, %154 : vector<8x256xf32>
    %cst_49 = arith.constant 0.797884583 : f32
    %156 = vector.broadcast %cst_49 : f32 to vector<8x256xf32>
    %157 = arith.mulf %156, %155 : vector<8x256xf32>
    %158 = math.tanh %157 : vector<8x256xf32>
    %cst_50 = arith.constant 1.000000e+00 : f32
    %159 = vector.broadcast %cst_50 : f32 to vector<8x256xf32>
    %160 = arith.addf %159, %158 : vector<8x256xf32>
    %161 = arith.mulf %150, %160 : vector<8x256xf32>
    %c0_51 = arith.constant 0 : index
    %c16_52 = arith.constant 16 : index
    %c0_53 = arith.constant 0 : index
    %162 = vector.load %arg4[%c0_51, %c16_52, %c0_53] : memref<1x32x256xf32, #tpu.memory_space<vmem>>, vector<1x8x256xf32>
    %163 = vector.shape_cast %162 : vector<1x8x256xf32> to vector<8x256xf32>
    %164 = vector.shape_cast %161 : vector<8x256xf32> to vector<1x8x256xf32>
    tpu.vector_store %arg4[%c0_51, %c16_52, %c0_53], %164 {strides = array<i32>} : memref<1x32x256xf32, #tpu.memory_space<vmem>>, vector<1x8x256xf32>,
    %c0_54 = arith.constant 0 : index
    %c24 = arith.constant 24 : index
    %c0_55 = arith.constant 0 : index
    %165 = vector.load %arg1[%c0_54, %c24, %c0_55] : memref<1x32x256xf32, #tpu.memory_space<vmem>>, vector<1x8x256xf32>
    %166 = vector.shape_cast %165 : vector<1x8x256xf32> to vector<8x256xf32>
    %c0_56 = arith.constant 0 : index
    %c24_57 = arith.constant 24 : index
    %c0_58 = arith.constant 0 : index
    %167 = vector.load %arg4[%c0_56, %c24_57, %c0_58] : memref<1x32x256xf32, #tpu.memory_space<vmem>>, vector<1x8x256xf32>
    %168 = vector.shape_cast %167 : vector<1x8x256xf32> to vector<8x256xf32>
    %169 = vector.shape_cast %166 : vector<8x256xf32> to vector<1x8x256xf32>
    tpu.vector_store %arg4[%c0_56, %c24_57, %c0_58], %169 {strides = array<i32>} : memref<1x32x256xf32, #tpu.memory_space<vmem>>, vector<1x8x256xf32>,
    return
  }
  func.func @transform_0(%arg0: i32) -> (i32, i32, i32) {
    %c0_i32 = arith.constant 0 : i32
    %c0_i32_0 = arith.constant 0 : i32
    %c0_i32_1 = arith.constant 0 : i32
    return %arg0, %c0_i32, %c0_i32_0 : i32, i32, i32
  }
  func.func @transform_1(%arg0: i32) -> (i32, i32, i32) {
    %c0_i32 = arith.constant 0 : i32
    %c0_i32_0 = arith.constant 0 : i32
    %c0_i32_1 = arith.constant 0 : i32
    %c0_i32_2 = arith.constant 0 : i32
    return %c0_i32, %c0_i32_0, %c0_i32_1 : i32, i32, i32
  }
  func.func @transform_2(%arg0: i32) -> (i32, i32) {
    %c0_i32 = arith.constant 0 : i32
    %c0_i32_0 = arith.constant 0 : i32
    %c0_i32_1 = arith.constant 0 : i32
    return %c0_i32, %c0_i32_0 : i32, i32
  }
  func.func @transform_3(%arg0: i32) -> (i32, i32, i32) {
    %c0_i32 = arith.constant 0 : i32
    %c0_i32_0 = arith.constant 0 : i32
    %c0_i32_1 = arith.constant 0 : i32
    return %arg0, %c0_i32, %c0_i32_0 : i32, i32, i32
  }
}

</mosaic_0001>

<bundles_post_ra>
// kernel: tpu_custom_call.1
= control target key start
LH: loop header
LB: loop body
LE: loop exit
PB: predicated region body
PF: predicated region fallthrough
CT: control target
= control target key end

     0   :  { %8 = vsyncpa [#allocation3], 0  ;;  %s1835_s0 = inlined_call_operand.hbm [shape: f32[2,32,256], index: 0, kind: input, shape index: {}]   ;;  %s1836_s1 = inlined_call_operand.hbm [shape: f32[3,8,72], index: 1, kind: input, shape index: {}]   ;;  %s1837_s2 = inlined_call_operand.hbm [shape: f32[9,256], index: 2, kind: input, shape index: {}]   ;;  %s1838_s3 = inlined_call_operand.hbm [shape: f32[2,32,256], index: 3, kind: output, shape index: {}]  }
   0x1   :  { %10 = vsyncpa [#allocation3 + $0x1], 0 }
   0x2   :  { %11 = vsyncpa [#allocation6], 0 }
   0x3   :  { %12 = vsyncpa [#allocation4], 0 }
   0x4   :  { %14 = vsyncpa [#allocation4 + $0x1], 0  ;;  %s1258_s12 = smov 0   ;;  %s1260_s13 = smov 0  }
   0x5   :  { %s1262_s14 = smov 0   ;;  %s1264_s15 = smov 0  }
   0x6 LB: > { %s1279_s16 = sadd.s32 4294967295, %s1218_s15   ;;  %s896_s17 = sadd.s32 4294967294, %s1218_s15   ;;  %s1218_s15 = sphi %s1264_s15, %s1858_s15   ;;  %s1214_s14 = sphi %s1262_s14, %s1857_s14   ;;  %s1210_s13 = sphi %s1260_s13, %s1856_s13   ;;  %s1206_s12 = sphi %s1258_s12, %s1855_s12  }
   0x7   : > { %p40_p0 = scmp.ne.s32.totalorder %s1210_s13, %s1206_s12  ;;  %p1839_p1 = scmp.eq.s32.totalorder %s1279_s16, 0 }
   0x8   : > { %p112_p3 = scmp.eq.s32.totalorder %s896_s17, 1  ;;  %p897_p5 = scmp.ge.s32.totalorder %s1218_s15, 1 }
   0x9   : > { %p1288_p4 = por %p1839_p1, %p40_p0  ;;  %p119_p7 = scmp.lt.s32.totalorder %s1218_s15, 3 }
   0xa   : > { %p1293_p6 = por %p112_p3, %p40_p0  ;;  %s1220_s21 = smov [#allocation5]  }
   0xb   : > { %s1842_s18 = scalar_select %p1288_p4, 1, 0 }
   0xc   : > { %s1843_s19 = scalar_select %p1293_p6, 1, 0 }
   0xd   : > { %p1298_p8 = pnand %p897_p5, %p119_p7  ;;  %s131_s22 = sshll.u32 %s1220_s21, 4  ;;  %s1302_s22 = int_to_ptr.vmem [resolvable:$true] %s131_s22 }
   0xe   : > { %s1221_s24 = smov [#allocation7]   ;;  %s1062_s28 = scalar_lea.hbm %s1836_s1, 384 }
   0xf   : > { %p981_p9 = pneg %p1298_p8  ;;  %s144_s25 = sshll.u32 %s1221_s24, 4  ;;  %s1313_s25 = int_to_ptr.vmem [resolvable:$true] %s144_s25 }
  0x10   : > { %p1063_p12 = scmp.ne.s32.totalorder %s1836_s1, %s1062_s28  ;;  %p1069_p5 = scmp.lt.u32.totalorder %s1062_s28, %s1836_s1 }
  0x11   : > { %p1309_p11 = pnand %p981_p9, %p1839_p1 }
  0x13   : > { %p1064_p13 = pneg %p1309_p11 }
  0x15   : > { %p1065_p0 = pnand %p1064_p13, %p1063_p12 }
  0x17   : > { %p1066_p3 = pneg %p1065_p0 }
  0x19   : > { %p1071_p7 = pnand %p1069_p5, %p1066_p3 }
  0x1b   : > { %1074 = shalt.err (!%p1071_p7)
}
  0x1c   : > { %s1075_s6 = scalar_lea.vmem %s1302_s22, 384  ;;  %p1083_p2 = scmp.lt.s32.totalorder %s1302_s22, %s1302_s22 }
  0x1d   : > { %p1076_p9 = scmp.ne.s32.totalorder %s1302_s22, %s1075_s6  ;;  %p1084_p12 = scmp.lt.s32.totalorder %s1075_s6, %s1075_s6 }
  0x1f   : > { %p1078_p10 = pnand %p1076_p9, %p1064_p13  ;;  %p1085_p0 = por %p1084_p12, %p1083_p2 }
  0x21   : > { %p1079_p1 = pneg %p1078_p10 }
  0x23   : > { %p1086_p6 = pnand %p1085_p0, %p1079_p1 }
  0x25   : > { %1089 = shalt.err (!%p1086_p6)
}
  0x26   : > { %s1222_s7 = smov 128   ;;  %s1223_s8 = smov 8  }
  0x27   : > { %984 = dma.hbm_to_vmem [thread:$0]  (!%p1309_p11), %s1836_s1, 384, %s1302_s22, [#allocation6], %s1222_s7, %s1222_s7, %s1223_s8  }
  0x28   : > { %s1090_s21 = scalar_lea.hbm %s1837_s2, 512 }
  0x29   : > { %p1091_p2 = scmp.ne.s32.totalorder %s1837_s2, %s1090_s21  ;;  %p1097_p10 = scmp.lt.u32.totalorder %s1090_s21, %s1837_s2 }
  0x2b   : > { %p1093_p1 = pnand %p1091_p2, %p1064_p13 }
  0x2d   : > { %p1094_p6 = pneg %p1093_p1 }
  0x2f   : > { %p1099_p3 = pnand %p1097_p10, %p1094_p6 }
  0x31   : > { %1102 = shalt.err (!%p1099_p3)
}
  0x32   : > { %s1103_s22 = scalar_lea.vmem %s1313_s25, 512  ;;  %p1111_p12 = scmp.lt.s32.totalorder %s1313_s25, %s1313_s25 }
  0x33   : > { %p1104_p5 = scmp.ne.s32.totalorder %s1313_s25, %s1103_s22  ;;  %p1112_p0 = scmp.lt.s32.totalorder %s1103_s22, %s1103_s22 }
  0x35   : > { %p1106_p7 = pnand %p1104_p5, %p1064_p13  ;;  %p1113_p2 = por %p1112_p0, %p1111_p12 }
  0x37   : > { %p1107_p9 = pneg %p1106_p7 }
  0x39   : > { %p1114_p1 = pnand %p1113_p2, %p1107_p9 }
  0x3b   : > { %1117 = shalt.err (!%p1114_p1)
}
  0x3c   : > { %s1224_s29 = smov 256   ;;  %s1225_s30 = smov 16  }
  0x3d   : > { %987 = dma.hbm_to_vmem [thread:$0]  (!%p1309_p11), %s1837_s2, 512, %s1313_s25, [#allocation6], %s1224_s29, %s1224_s29, %s1225_s30  }
  0x3e   : > { %s1371_s6 = sadd.s32 1, %s1218_s15   ;;  %s27_s8 = sadd.s32 1, %s1214_s14 }
  0x3f   : > { %s24_s7 = ssub.s32 %s1218_s15, %s1371_s6  ;;  %p34_p6 = scmp.ne.s32.totalorder %s1214_s14, %s1210_s13 }
  0x40   : > { %p25_p13 = scmp.eq.s32.totalorder %s24_s7, 0  ;;  %p35_p10 = scmp.eq.s32.totalorder %s1218_s15, 0 }
  0x41   : > { %p1846_p5 = scmp.eq.s32.totalorder %s1279_s16, 1  ;;  %p998_p9 = scmp.lt.s32.totalorder %s1218_s15, 2 }
  0x42   : > { %s1380_s9 = scalar_select %p25_p13, %s1214_s14, %s27_s8  }
  0x43   : > { %p36_p3 = por %p35_p10, %p34_p6  ;;  %p1384_p7 = por %p1846_p5, %p34_p6 }
  0x44   : > { %s158_s10 = sand.u32 1, %s1214_s14   ;;  %s919_s25 = sshll.u32 %s1218_s15, 10 }
  0x45   : > { %s1847_s23 = scalar_select %p1384_p7, 1, 0 }
  0x46   : > { %s901_s11 = sshll.u32 %s158_s10, 6  ;;  %s1394_s24 = scalar_lea.hbm %s1835_s0, %s919_s25 }
  0x47   : > { %s162_s26 = scalar_lea.vmem [#allocation2], %s901_s11  ;;  %p1398_p11 = pnand %p998_p9, %p36_p3 }
  0x48   : > { %s169_s27 = sshll.u32 %s162_s26, 4  ;;  %s1402_s22 = scalar_lea.sflag [#allocation3], %s158_s10  ;;  %s1396_s27 = int_to_ptr.vmem [resolvable:$true] %s169_s27 }
  0x49   : > { %s1118_s4 = scalar_lea.hbm %s1394_s24, 1024  ;;  %p1120_p0 = pneg %p1398_p11 }
  0x4a   : > { %p1119_p12 = scmp.ne.s32.totalorder %s1394_s24, %s1118_s4  ;;  %s1123_s8 = scalar_lea.hbm %s1835_s0, 2048 }
  0x4b   : > { %p1124_p13 = scmp.lt.u32.totalorder %s1394_s24, %s1835_s0  ;;  %p1125_p6 = scmp.lt.u32.totalorder %s1123_s8, %s1118_s4 }
  0x4c   : > { %p1121_p2 = pnand %p1120_p0, %p1119_p12  ;;  %p1127_p3 = scmp.lt.u32.totalorder %s1118_s4, %s1394_s24 }
  0x4d   : > { %p1126_p10 = por %p1125_p6, %p1124_p13 }
  0x4e   : > { %p1122_p1 = pneg %p1121_p2 }
  0x4f   : > { %p1128_p5 = por %p1127_p3, %p1126_p10 }
  0x51   : > { %p1129_p9 = pnand %p1128_p5, %p1122_p1 }
  0x53   : > { %1132 = shalt.err (!%p1129_p9)
}
  0x54   : > { %s1133_s10 = scalar_lea.vmem %s1396_s27, 1024  ;;  %s1226_s17 = smov [#allocation2]  }
  0x55   : > { %p1134_p12 = scmp.ne.s32.totalorder %s1396_s27, %s1133_s10  ;;  %s1138_s21 = sshll.u32 %s1226_s17, 4  ;;  %s1139_s21 = int_to_ptr.vmem [resolvable:$false] %s1138_s21 }
  0x56   : > { %s1140_s26 = scalar_lea.vmem %s1139_s21, 2048  ;;  %p1141_p4 = scmp.lt.s32.totalorder %s1396_s27, %s1139_s21 }
  0x57   : > { %p1136_p2 = pnand %p1134_p12, %p1120_p0  ;;  %p1142_p13 = scmp.lt.s32.totalorder %s1140_s26, %s1133_s10 }
  0x59   : > { %p1137_p7 = pneg %p1136_p2  ;;  %p1143_p6 = por %p1142_p13, %p1141_p4 }
  0x5b   : > { %p1144_p10 = pnand %p1143_p6, %p1137_p7 }
  0x5d   : > { %1147 = shalt.err (!%p1144_p10)
}
  0x5e   : > { %991 = dma.hbm_to_vmem [thread:$0]  (!%p1398_p11), %s1394_s24, 1024, %s1396_s27, %s1402_s22, %s1224_s29, %s1224_s29, %s1225_s30  }
  0x5f   : > { %181 = sbr.rel (%p1298_p8) target bundleno = 1290 (0x50a), region = 32  ;;  %s1436_s4 = sand.u32 (!%p1298_p8), 1, %s1210_s13  }
  0x60   : > { %s905_s5 = sshll.u32 (!%p1298_p8), %s1436_s4, 6  ;;  %s184_s7 = scalar_lea.sflag (!%p1298_p8), [#allocation3], %s1436_s4 }
  0x61   : > { %s1442_s28 = scalar_lea.vmem (!%p1298_p8), [#allocation2], %s905_s5  ;;  %p1849_p4 = scmp.ne.s32.totalorder (!%p1298_p8), %s1842_s18, 0 }
  0x66   : > { %1193 = dma.done.wait (%p1849_p4), %s184_s7, 1024  }
  0x67   : > { %1195 = vsyncadd (%p1849_p4), %s184_s7, 4294966272  ;;  %p1850_p7 = scmp.eq.s32.totalorder %s1279_s16, 0 }
  0x69   : > { %1197 = dma.done.wait (%p1850_p7), [#allocation6], 896   ;;  %p1851_p8 = pmov %p1850_p7 }
  0x6a   : > { %v1453_v0 = vld [vmem:[%s1442_s28] sm:$0xff]  ;;  %s1227_s20 = smov 16   ;;  %s1228_s29 = smov 17   ;;  %v1460_v1 = vld [vmem:[%s1442_s28 + $0x8] sm:$0xff]  ;;  %v1233_v2 = vmov 0.0   ;;  %v229_v3 = vlaneseq  ;;  %v1498_v8 = vld [vmem:[#allocation7] sm:$0xff] }
  0x6b   : > { %1199 = vsyncadd (%p1851_p8), [#allocation6], 4294966400  ;;  %244 = vrot.lane.b32.xlu1 %v1453_v0, %s1227_s20  ;;  %225 = vrot.lane.b32.xlu0 %v1453_v0, %s1228_s29  ;;  %s1229_s18 = smov 15   ;;  %s1230_s30 = smov 1   ;;  %v1500_v9 = vld [vmem:[#allocation7 + $0x8] sm:$0xff]  ;;  %vm363_vm8 = vcmask 588800  }
  0x6c   : > { %s1231_s24 = smov 127   ;;  %s1232_s27 = smov 113   ;;  %431 = vmatprep.mubr.f32.mxu0 %v1233_v2  ;;  %595 = vmatprep.mubr.f32.mxu1 %v1233_v2  ;;  %v1492_v4 = vshrl.u32 %v229_v3, 7  ;;  %v1494_v5 = vand.u32 127, %v229_v3 }
  0x6d   : > { %s1234_s22 = smov 112   ;;  %s1235_s8 = smov 111  }
  0x6e   : > { %v253_v6 = vsub.s32 1, %v1492_v4  ;;  %v236_v7 = vsub.s32 0, %v1492_v4  ;;  %vm248_vm0 = vcmp.lt.s32.totalorder %v1494_v5, 16  ;;  %vm231_vm1 = vcmp.lt.s32.totalorder %v1494_v5, 17  ;;  %s1617_s11 = scalar_lea.vmem [#allocation8], %s905_s5  ;;  %s920_s25 = sshll.u32 %s1279_s16, 10 }
  0x6f   : > { %246 = vrot.lane.b32.xlu1 %v1460_v1, %s1227_s20  ;;  %227 = vrot.lane.b32.xlu0 %v1460_v1, %s1228_s29  ;;  %v270_v18 = vsub.s32 2, %v1492_v4  ;;  %v287_v19 = vsub.s32 3, %v1492_v4  ;;  %vm265_vm2 = vcmp.lt.s32.totalorder %v1494_v5, 15  ;;  %vm282_vm3 = vcmp.lt.s32.totalorder %v1494_v5, 1  ;;  %s804_s10 = sshll.u32 %s1617_s11, 4  ;;  %s1786_s26 = scalar_lea.hbm %s1838_s3, %s920_s25  ;;  %s1788_s10 = int_to_ptr.vmem [resolvable:$true] %s804_s10 }
  0x70   : > { %v1505_v12 = vrot.slane %v1498_v8, %v253_v6  ;;  %v1508_v13 = vrot.slane %v1498_v8, %v236_v7  ;;  %v1511_v14 = vrot.slane %v1500_v9, %v236_v7  ;;  %v1514_v15 = vrot.slane %v1500_v9, %v253_v6  ;;  %s791_s16 = scalar_lea.sflag [#allocation4], %s1436_s4  ;;  %s1148_s5 = scalar_lea.vmem %s1788_s10, 1024 }
  0x71   : > { %v304_v32 = vsub.s32 5, %v1492_v4  ;;  %v1534_v33 = vrot.slane %v1498_v8, %v270_v18  ;;  %v1537_v34 = vrot.slane %v1500_v9, %v270_v18  ;;  %v1540_v35 = vrot.slane %v1498_v8, %v287_v19  ;;  %p1149_p11 = scmp.ne.s32.totalorder %s1788_s10, %s1148_s5  ;;  %p1852_p0 = scmp.ne.s32.totalorder %s1847_s23, 0 }
  0x72   : > { %v1543_v36 = vrot.slane %v1500_v9, %v287_v19  ;;  %vm299_vm4 = vcmp.lt.s32.totalorder %v1494_v5, 127  ;;  %v321_v55 = vsub.s32 6, %v1492_v4  ;;  %v338_v58 = vsub.s32 7, %v1492_v4  ;;  %v1601_v19 = vld [vmem:[#allocation7 + $0x18] ss:$0 sm:$0xff]  ;;  %s1236_s7 = smov [#allocation8]  }
  0x73   : > { %263 = vrot.lane.b32.xlu1 %v1460_v1, %s1229_s18  ;;  %261 = vrot.lane.b32.xlu0 %v1453_v0, %s1229_s18  ;;  %v1555_v43 = vrot.slane %v1498_v8, %v304_v32  ;;  %v1558_v44 = vrot.slane %v1500_v9, %v304_v32  ;;  %vm316_vm5 = vcmp.lt.s32.totalorder %v1494_v5, 113  ;;  %vm333_vm6 = vcmp.lt.s32.totalorder %v1494_v5, 112  ;;  %p1150_p1 = pnand %p1149_p11, %p1852_p0 }
  0x74   : > { %v1576_v63 = vrot.slane %v1498_v8, %v321_v55  ;;  %v1579_v3 = vrot.slane %v1500_v9, %v321_v55  ;;  %v1583_v4 = vrot.slane %v1498_v8, %v338_v58  ;;  %v1586_v6 = vrot.slane %v1500_v9, %v338_v58  ;;  %v459_v55 = vld [vmem:[%s1442_s28 + $0x18] sm:$0xff] }
  0x75   : > { %vm350_vm7 = vcmp.lt.s32.totalorder %v1494_v5, 111  ;;  %p1151_p3 = pneg %p1150_p1 }
  0x77   : > { %280 = vrot.lane.b32.xlu1 %v1460_v1, %s1230_s30  ;;  %278 = vrot.lane.b32.xlu0 %v1453_v0, %s1230_s30 }
  0x7b   : > { %297 = vrot.lane.b32.xlu1 %v1460_v1, %s1231_s24  ;;  %295 = vrot.lane.b32.xlu0 %v1453_v0, %s1231_s24 }
  0x7f   : > { %314 = vrot.lane.b32.xlu1 %v1460_v1, %s1232_s27  ;;  %312 = vrot.lane.b32.xlu0 %v1453_v0, %s1232_s27 }
  0x83   : > { %331 = vrot.lane.b32.xlu1 %v1460_v1, %s1234_s22  ;;  %329 = vrot.lane.b32.xlu0 %v1453_v0, %s1234_s22 }
  0x87   : > { %348 = vrot.lane.b32.xlu1 %v1460_v1, %s1235_s8  ;;  %346 = vrot.lane.b32.xlu0 %v1453_v0, %s1235_s8 }
  0xdd   : > { %v245_v10 = vpop.permute.xlu1 %244  ;;  %v226_v11 = vpop.permute.xlu0 %225 }
  0xe1   : > { %v247_v16 = vpop.permute.xlu1 %246  ;;  %v228_v17 = vpop.permute.xlu0 %227 }
  0xe2   : > { %v249_v20 = vsel %vm248_vm0, %v245_v10, %v247_v16  ;;  %v250_v21 = vsel %vm248_vm0, %v247_v16, %v245_v10  ;;  %v232_v22 = vsel %vm231_vm1, %v226_v11, %v228_v17  ;;  %v233_v23 = vsel %vm231_vm1, %v228_v17, %v226_v11 }
  0xe3   : > { %v259_v24 = vmul.f32 %v1505_v12, %v250_v21  ;;  %v242_v25 = vmul.f32 %v1508_v13, %v233_v23  ;;  %v243_v26 = vmul.f32 %v1511_v14, %v232_v22  ;;  %v260_v27 = vmul.f32 %v1514_v15, %v249_v20  ;;  %v1603_v22 = vld [vmem:[#allocation7 + $0x10] ss:$0 sm:$0xff] }
  0xe5   : > { %v264_v28 = vpop.permute.xlu1 %263  ;;  %v262_v29 = vpop.permute.xlu0 %261  ;;  %v921_v30 = vpack.c.bf16 %v260_v27, %v243_v26  ;;  %v923_v31 = vpack.c.bf16 %v259_v24, %v242_v25 }
  0xe6   : > { %v266_v37 = vsel %vm265_vm2, %v262_v29, %v264_v28  ;;  %v267_v38 = vsel %vm265_vm2, %v264_v28, %v262_v29  ;;  %v224_v29 = vld [vmem:[#allocation5] sm:$0xff] }
  0xe7   : > { %922 = vmatprep.subr.bf16.mxu0 %v921_v30  ;;  %v276_v45 = vmul.f32 %v1534_v33, %v267_v38  ;;  %v277_v46 = vmul.f32 %v1537_v34, %v266_v37 }
  0xe8   : > { %924 = vmatpush1.bf16.msra.mxu0 %v923_v31 }
  0xe9   : > { %v281_v39 = vpop.permute.xlu1 %280  ;;  %v279_v40 = vpop.permute.xlu0 %278 }
  0xea   : > { %v283_v41 = vsel %vm282_vm3, %v279_v40, %v281_v39  ;;  %v284_v42 = vsel %vm282_vm3, %v281_v39, %v279_v40 }
  0xeb   : > { %v293_v47 = vmul.f32 %v1540_v35, %v284_v42  ;;  %v294_v48 = vmul.f32 %v1543_v36, %v283_v41 }
  0xed   : > { %v298_v49 = vpop.permute.xlu1 %297  ;;  %v296_v50 = vpop.permute.xlu0 %295  ;;  %v925_v51 = vpack.c.bf16 %v294_v48, %v277_v46  ;;  %v927_v52 = vpack.c.bf16 %v293_v47, %v276_v45 }
  0xee   : > { %v300_v53 = vsel %vm299_vm4, %v296_v50, %v298_v49  ;;  %v301_v54 = vsel %vm299_vm4, %v298_v49, %v296_v50 }
  0xef   : > { %v310_v56 = vmul.f32 %v1555_v43, %v300_v53  ;;  %v311_v57 = vmul.f32 %v1558_v44, %v301_v54  ;;  %926 = vmatprep.subr.bf16.mxu0 %v925_v51  ;;  %v458_v51 = vld [vmem:[%s1442_s28 + $0x10] sm:$0xff] }
  0xf0   : > { %928 = vmatpush1.bf16.msra.mxu0 %v927_v52 }
  0xf1   : > { %v315_v59 = vpop.permute.xlu1 %314  ;;  %v313_v60 = vpop.permute.xlu0 %312  ;;  %v929_v61 = vpack.c.bf16 %v311_v57, %v1460_v1  ;;  %v931_v62 = vpack.c.bf16 %v310_v56, %v1453_v0 }
  0xf2   : > { %v317_v1 = vsel %vm316_vm5, %v313_v60, %v315_v59  ;;  %v318_v0 = vsel %vm316_vm5, %v315_v59, %v313_v60 }
  0xf3   : > { %930 = vmatprep.subr.bf16.mxu0 %v929_v61  ;;  %v327_v8 = vmul.f32 %v1576_v63, %v317_v1  ;;  %v328_v9 = vmul.f32 %v1579_v3, %v318_v0 }
  0xf4   : > { %932 = vmatpush1.bf16.msra.mxu0 %v931_v62 }
  0xf5   : > { %v332_v7 = vpop.permute.xlu1 %331  ;;  %v330_v10 = vpop.permute.xlu0 %329 }
  0xf6   : > { %v334_v11 = vsel %vm333_vm6, %v330_v10, %v332_v7  ;;  %v335_v16 = vsel %vm333_vm6, %v332_v7, %v330_v10 }
  0xf7   : > { %v344_v17 = vmul.f32 %v1583_v4, %v334_v11  ;;  %v345_v18 = vmul.f32 %v1586_v6, %v335_v16 }
  0xf9   : > { %v349_v20 = vpop.permute.xlu1 %348  ;;  %v347_v21 = vpop.permute.xlu0 %346  ;;  %v933_v23 = vpack.c.bf16 %v345_v18, %v328_v9  ;;  %v935_v24 = vpack.c.bf16 %v344_v17, %v327_v8 }
  0xfa   : > { %v351_v25 = vsel %vm350_vm7, %v347_v21, %v349_v20  ;;  %v352_v26 = vsel %vm350_vm7, %v349_v20, %v347_v21 }
  0xfb   : > { %v362_v27 = vmul.f32 %v1601_v19, %v352_v26  ;;  %934 = vmatprep.subr.bf16.mxu0 %v933_v23  ;;  %v361_v28 = vmul.f32 %v1603_v22, %v351_v25 }
  0xfc   : > { %936 = vmatpush1.bf16.msra.mxu0 %v935_v24 }
  0xfd   : > { %383 = vmatprep.subr.mxu0 %v362_v27 }
 0x100   : > { %384 = vmatpush1.msra.mxu0 %v361_v28 }
 0x101   : > { %911 = vmatmul.mubr.msk.f32.vlgmr.msra.gmra.mrb[0].mxu0 %vm363_vm8, %v224_v29 }
 0x102   : > { %759 = vmatprep.mubr.f32.mxu0 %v1233_v2 }
 0x1d4   : > { %v433_v30 = vpop.f32.mrb[0].mxu0 }
 0x1d5   : > { %v440_v31 = vmul.f32 0.044715, %v433_v30  ;;  %v435_v32 = vpop.f32.mrb[1].mxu0  ;;  %v438_v2 = vmul.f32 0.5, %v433_v30 }
 0x1d6   : > { %v441_v37 = vmul.f32 0.044715, %v435_v32  ;;  %v439_v52 = vmul.f32 0.5, %v435_v32 }
 0x1d7   : > { %v442_v38 = vmul.f32 %v440_v31, %v433_v30 }
 0x1d8   : > { %v443_v39 = vmul.f32 %v441_v37, %v435_v32 }
 0x1d9   : > { %v444_v40 = vmul.f32 %v442_v38, %v433_v30 }
 0x1da   : > { %v445_v41 = vmul.f32 %v443_v39, %v435_v32 }
 0x1db   : > { %v446_v42 = vadd.f32 %v444_v40, %v433_v30 }
 0x1dc   : > { %v447_v45 = vadd.f32 %v445_v41, %v435_v32 }
 0x1dd   : > { %v448_v46 = vmul.f32 0.7978846, %v446_v42 }
 0x1de   : > { %v449_v47 = vmul.f32 0.7978846, %v447_v45 }
 0x1df   : > { %1050 = vtanh.f32 %v448_v46 }
 0x1e0   : > { %1052 = vtanh.f32 %v449_v47 }
 0x1e9   : > { %v1051_v48 = vpop.eup %1050 }
 0x1ea   : > { %v1053_v49 = vpop.eup %1052  ;;  %v452_v50 = vadd.f32 1.0, %v1051_v48 }
 0x1eb   : > { %v453_v53 = vadd.f32 1.0, %v1053_v49 }
 0x1ec   : > { %v454_v54 = vmul.f32 %v452_v50, %v438_v2 }
 0x1ed   : > { %v455_v56 = vmul.f32 %v453_v53, %v439_v52 }
 0x1ee   : > { %456 = vst [vmem:[%s1617_s11] sm:$0xff] %v454_v54  ;;  %v1620_v57 = vadd.f32 %v458_v51, %v454_v54 }
 0x1ef   : > { %457 = vst [vmem:[%s1617_s11 + $0x8] sm:$0xff] %v455_v56  ;;  %v461_v58 = vadd.f32 %v459_v55, %v455_v56 }
 0x1f0   : > { %464 = vrot.lane.b32.xlu0 %v1620_v57, %s1228_s29 }
 0x1f1   : > { %466 = vrot.lane.b32.xlu1 %v461_v58, %s1228_s29 }
 0x1f4   : > { %472 = vrot.lane.b32.xlu0 %v1620_v57, %s1227_s20 }
 0x1f5   : > { %474 = vrot.lane.b32.xlu1 %v461_v58, %s1227_s20 }
 0x1f8   : > { %480 = vrot.lane.b32.xlu0 %v1620_v57, %s1229_s18 }
 0x1f9   : > { %482 = vrot.lane.b32.xlu1 %v461_v58, %s1229_s18 }
 0x1fc   : > { %488 = vrot.lane.b32.xlu0 %v1620_v57, %s1230_s30 }
 0x1fd   : > { %490 = vrot.lane.b32.xlu1 %v461_v58, %s1230_s30 }
 0x200   : > { %496 = vrot.lane.b32.xlu0 %v1620_v57, %s1231_s24 }
 0x201   : > { %498 = vrot.lane.b32.xlu1 %v461_v58, %s1231_s24 }
 0x204   : > { %504 = vrot.lane.b32.xlu0 %v1620_v57, %s1232_s27 }
 0x205   : > { %506 = vrot.lane.b32.xlu1 %v461_v58, %s1232_s27 }
 0x208   : > { %512 = vrot.lane.b32.xlu0 %v1620_v57, %s1234_s22 }
 0x209   : > { %514 = vrot.lane.b32.xlu1 %v461_v58, %s1234_s22 }
 0x20c   : > { %520 = vrot.lane.b32.xlu0 %v1620_v57, %s1235_s8 }
 0x20d   : > { %522 = vrot.lane.b32.xlu1 %v461_v58, %s1235_s8 }
 0x262   : > { %v465_v59 = vpop.permute.xlu0 %464 }
 0x263   : > { %v467_v60 = vpop.permute.xlu1 %466 }
 0x264   : > { %v468_v61 = vsel %vm231_vm1, %v465_v59, %v467_v60  ;;  %v469_v62 = vsel %vm231_vm1, %v467_v60, %v465_v59 }
 0x265   : > { %v470_v11 = vmul.f32 %v469_v62, %v1508_v13  ;;  %v471_v8 = vmul.f32 %v468_v61, %v1511_v14 }
 0x266   : > { %v473_v1 = vpop.permute.xlu0 %472 }
 0x267   : > { %v475_v0 = vpop.permute.xlu1 %474 }
 0x268   : > { %v476_v7 = vsel %vm248_vm0, %v473_v1, %v475_v0  ;;  %v477_v10 = vsel %vm248_vm0, %v475_v0, %v473_v1 }
 0x269   : > { %v478_v16 = vmul.f32 %v477_v10, %v1505_v12  ;;  %v479_v9 = vmul.f32 %v476_v7, %v1514_v15 }
 0x26a   : > { %v481_v17 = vpop.permute.xlu0 %480 }
 0x26b   : > { %v483_v18 = vpop.permute.xlu1 %482  ;;  %v937_v20 = vpack.c.bf16 %v479_v9, %v471_v8  ;;  %v939_v21 = vpack.c.bf16 %v478_v16, %v470_v11  ;;  %v463_v16 = vld [vmem:[#allocation5 + $0x8] sm:$0xff] }
 0x26c   : > { %v484_v23 = vsel %vm265_vm2, %v481_v17, %v483_v18  ;;  %v485_v24 = vsel %vm265_vm2, %v483_v18, %v481_v17 }
 0x26d   : > { %938 = vmatprep.subr.bf16.mxu1 %v937_v20  ;;  %v486_v29 = vmul.f32 %v485_v24, %v1534_v33  ;;  %v487_v30 = vmul.f32 %v484_v23, %v1537_v34 }
 0x26e   : > { %v489_v25 = vpop.permute.xlu0 %488  ;;  %940 = vmatpush1.bf16.msra.mxu1 %v939_v21 }
 0x26f   : > { %v491_v26 = vpop.permute.xlu1 %490 }
 0x270   : > { %v492_v27 = vsel %vm282_vm3, %v489_v25, %v491_v26  ;;  %v493_v28 = vsel %vm282_vm3, %v491_v26, %v489_v25 }
 0x271   : > { %v494_v31 = vmul.f32 %v493_v28, %v1540_v35  ;;  %v495_v32 = vmul.f32 %v492_v27, %v1543_v36 }
 0x272   : > { %v497_v37 = vpop.permute.xlu0 %496 }
 0x273   : > { %v499_v38 = vpop.permute.xlu1 %498  ;;  %v941_v39 = vpack.c.bf16 %v495_v32, %v487_v30  ;;  %v943_v40 = vpack.c.bf16 %v494_v31, %v486_v29 }
 0x274   : > { %v500_v41 = vsel %vm299_vm4, %v497_v37, %v499_v38  ;;  %v501_v42 = vsel %vm299_vm4, %v499_v38, %v497_v37  ;;  %v622_v37 = vld [vmem:[%s1442_s28 + $0x20] sm:$0xff] }
 0x275   : > { %v502_v45 = vmul.f32 %v500_v41, %v1555_v43  ;;  %v503_v46 = vmul.f32 %v501_v42, %v1558_v44  ;;  %942 = vmatprep.subr.bf16.mxu1 %v941_v39  ;;  %v623_v41 = vld [vmem:[%s1442_s28 + $0x28] sm:$0xff] }
 0x276   : > { %v505_v47 = vpop.permute.xlu0 %504  ;;  %944 = vmatpush1.bf16.msra.mxu1 %v943_v40 }
 0x277   : > { %v507_v48 = vpop.permute.xlu1 %506  ;;  %v945_v49 = vpack.c.bf16 %v503_v46, %v461_v58  ;;  %v947_v2 = vpack.c.bf16 %v502_v45, %v1620_v57 }
 0x278   : > { %v508_v50 = vsel %vm316_vm5, %v505_v47, %v507_v48  ;;  %v509_v51 = vsel %vm316_vm5, %v507_v48, %v505_v47 }
 0x279   : > { %946 = vmatprep.subr.bf16.mxu1 %v945_v49  ;;  %v510_v56 = vmul.f32 %v508_v50, %v1576_v63  ;;  %v511_v57 = vmul.f32 %v509_v51, %v1579_v3 }
 0x27a   : > { %v513_v52 = vpop.permute.xlu0 %512  ;;  %948 = vmatpush1.bf16.msra.mxu1 %v947_v2 }
 0x27b   : > { %v515_v53 = vpop.permute.xlu1 %514 }
 0x27c   : > { %v516_v54 = vsel %vm333_vm6, %v513_v52, %v515_v53  ;;  %v517_v55 = vsel %vm333_vm6, %v515_v53, %v513_v52 }
 0x27d   : > { %v518_v58 = vmul.f32 %v516_v54, %v1583_v4  ;;  %v519_v59 = vmul.f32 %v517_v55, %v1586_v6 }
 0x27e   : > { %v521_v60 = vpop.permute.xlu0 %520 }
 0x27f   : > { %v523_v61 = vpop.permute.xlu1 %522  ;;  %v949_v62 = vpack.c.bf16 %v519_v59, %v511_v57  ;;  %v951_v1 = vpack.c.bf16 %v518_v58, %v510_v56 }
 0x280   : > { %v525_v0 = vsel %vm350_vm7, %v523_v61, %v521_v60  ;;  %v524_v7 = vsel %vm350_vm7, %v521_v60, %v523_v61 }
 0x281   : > { %v527_v10 = vmul.f32 %v1601_v19, %v525_v0  ;;  %950 = vmatprep.subr.bf16.mxu1 %v949_v62  ;;  %v526_v11 = vmul.f32 %v1603_v22, %v524_v7 }
 0x282   : > { %952 = vmatpush1.bf16.msra.mxu1 %v951_v1 }
 0x283   : > { %547 = vmatprep.subr.mxu1 %v527_v10 }
 0x286   : > { %548 = vmatpush1.msra.mxu1 %v526_v11 }
 0x287   : > { %912 = vmatmul.mubr.msk.f32.vlgmr.msra.gmra.mrb[0].mxu1 %vm363_vm8, %v463_v16 }
 0x35a   : > { %v597_v8 = vpop.f32.mrb[0].mxu1 }
 0x35b   : > { %v604_v9 = vmul.f32 0.044715, %v597_v8  ;;  %v599_v17 = vpop.f32.mrb[1].mxu1  ;;  %v602_v31 = vmul.f32 0.5, %v597_v8 }
 0x35c   : > { %v605_v18 = vmul.f32 0.044715, %v599_v17  ;;  %v603_v38 = vmul.f32 0.5, %v599_v17 }
 0x35d   : > { %v606_v20 = vmul.f32 %v604_v9, %v597_v8 }
 0x35e   : > { %v607_v21 = vmul.f32 %v605_v18, %v599_v17 }
 0x35f   : > { %v608_v23 = vmul.f32 %v606_v20, %v597_v8 }
 0x360   : > { %v609_v24 = vmul.f32 %v607_v21, %v599_v17 }
 0x361   : > { %v610_v25 = vadd.f32 %v608_v23, %v597_v8 }
 0x362   : > { %v611_v26 = vadd.f32 %v609_v24, %v599_v17 }
 0x363   : > { %v612_v27 = vmul.f32 0.7978846, %v610_v25 }
 0x364   : > { %v613_v28 = vmul.f32 0.7978846, %v611_v26 }
 0x365   : > { %1054 = vtanh.f32 %v612_v27 }
 0x366   : > { %1056 = vtanh.f32 %v613_v28 }
 0x36f   : > { %v1055_v29 = vpop.eup %1054 }
 0x370   : > { %v1057_v30 = vpop.eup %1056  ;;  %v616_v32 = vadd.f32 1.0, %v1055_v29 }
 0x371   : > { %v617_v39 = vadd.f32 1.0, %v1057_v30 }
 0x372   : > { %v618_v40 = vmul.f32 %v616_v32, %v602_v31 }
 0x373   : > { %v619_v42 = vmul.f32 %v617_v39, %v603_v38 }
 0x374   : > { %620 = vst [vmem:[%s1617_s11 + $0x10] sm:$0xff] %v618_v40  ;;  %v1700_v45 = vadd.f32 %v622_v37, %v618_v40 }
 0x375   : > { %621 = vst [vmem:[%s1617_s11 + $0x18] sm:$0xff] %v619_v42  ;;  %v625_v46 = vadd.f32 %v623_v41, %v619_v42  ;;  %v786_v41 = vld [vmem:[%s1442_s28 + $0x30] sm:$0xff]  ;;  %v787_v42 = vld [vmem:[%s1442_s28 + $0x38] sm:$0xff]  ;;  %s1152_s28 = sshll.u32 %s1236_s7, 4  ;;  %s1153_s28 = int_to_ptr.vmem [resolvable:$false] %s1152_s28 }
 0x376   : > { %628 = vrot.lane.b32.xlu0 %v1700_v45, %s1228_s29  ;;  %788 = vst [vmem:[%s1617_s11 + $0x30] sm:$0xff] %v786_v41  ;;  %789 = vst [vmem:[%s1617_s11 + $0x38] sm:$0xff] %v787_v42  ;;  %p1155_p5 = scmp.lt.s32.totalorder %s1788_s10, %s1153_s28 }
 0x377   : > { %630 = vrot.lane.b32.xlu1 %v625_v46, %s1228_s29  ;;  %s1154_s29 = scalar_lea.vmem %s1153_s28, 2048 }
 0x378   : > { %p1156_p9 = scmp.lt.s32.totalorder %s1154_s29, %s1148_s5 }
 0x37a   : > { %636 = vrot.lane.b32.xlu0 %v1700_v45, %s1227_s20  ;;  %p1157_p12 = por %p1156_p9, %p1155_p5 }
 0x37b   : > { %638 = vrot.lane.b32.xlu1 %v625_v46, %s1227_s20 }
 0x37c   : > { %p1158_p2 = pnand %p1157_p12, %p1151_p3 }
 0x37e   : > { %644 = vrot.lane.b32.xlu0 %v1700_v45, %s1229_s18 }
 0x37f   : > { %646 = vrot.lane.b32.xlu1 %v625_v46, %s1229_s18 }
 0x382   : > { %652 = vrot.lane.b32.xlu0 %v1700_v45, %s1230_s30 }
 0x383   : > { %654 = vrot.lane.b32.xlu1 %v625_v46, %s1230_s30 }
 0x386   : > { %660 = vrot.lane.b32.xlu0 %v1700_v45, %s1231_s24 }
 0x387   : > { %662 = vrot.lane.b32.xlu1 %v625_v46, %s1231_s24 }
 0x38a   : > { %668 = vrot.lane.b32.xlu0 %v1700_v45, %s1232_s27 }
 0x38b   : > { %670 = vrot.lane.b32.xlu1 %v625_v46, %s1232_s27 }
 0x38e   : > { %676 = vrot.lane.b32.xlu0 %v1700_v45, %s1234_s22 }
 0x38f   : > { %678 = vrot.lane.b32.xlu1 %v625_v46, %s1234_s22 }
 0x392   : > { %684 = vrot.lane.b32.xlu0 %v1700_v45, %s1235_s8 }
 0x393   : > { %686 = vrot.lane.b32.xlu1 %v625_v46, %s1235_s8 }
 0x3e8   : > { %v629_v47 = vpop.permute.xlu0 %628 }
 0x3e9   : > { %v631_v48 = vpop.permute.xlu1 %630 }
 0x3ea   : > { %v632_v49 = vsel %vm231_vm1, %v629_v47, %v631_v48  ;;  %v633_v2 = vsel %vm231_vm1, %v631_v48, %v629_v47 }
 0x3eb   : > { %v634_v54 = vmul.f32 %v633_v2, %v1508_v13  ;;  %v635_v55 = vmul.f32 %v632_v49, %v1511_v14 }
 0x3ec   : > { %v637_v50 = vpop.permute.xlu0 %636 }
 0x3ed   : > { %v639_v51 = vpop.permute.xlu1 %638 }
 0x3ee   : > { %v640_v52 = vsel %vm248_vm0, %v637_v50, %v639_v51  ;;  %v641_v53 = vsel %vm248_vm0, %v639_v51, %v637_v50 }
 0x3ef   : > { %v642_v56 = vmul.f32 %v641_v53, %v1505_v12  ;;  %v643_v57 = vmul.f32 %v640_v52, %v1514_v15 }
 0x3f0   : > { %v645_v58 = vpop.permute.xlu0 %644 }
 0x3f1   : > { %v955_v59 = vpack.c.bf16 %v642_v56, %v634_v54  ;;  %v647_v60 = vpop.permute.xlu1 %646  ;;  %v953_v61 = vpack.c.bf16 %v643_v57, %v635_v55 }
 0x3f2   : > { %v648_v62 = vsel %vm265_vm2, %v645_v58, %v647_v60  ;;  %v649_v1 = vsel %vm265_vm2, %v647_v60, %v645_v58 }
 0x3f3   : > { %954 = vmatprep.subr.bf16.mxu0 %v953_v61  ;;  %v650_v15 = vmul.f32 %v649_v1, %v1534_v33  ;;  %v651_v7 = vmul.f32 %v648_v62, %v1537_v34 }
 0x3f4   : > { %v653_v0 = vpop.permute.xlu0 %652  ;;  %956 = vmatpush1.bf16.msra.mxu0 %v955_v59 }
 0x3f5   : > { %v655_v13 = vpop.permute.xlu1 %654 }
 0x3f6   : > { %v656_v14 = vsel %vm282_vm3, %v653_v0, %v655_v13  ;;  %v657_v12 = vsel %vm282_vm3, %v655_v13, %v653_v0 }
 0x3f7   : > { %v658_v10 = vmul.f32 %v657_v12, %v1540_v35  ;;  %v659_v11 = vmul.f32 %v656_v14, %v1543_v36 }
 0x3f8   : > { %v661_v16 = vpop.permute.xlu0 %660 }
 0x3f9   : > { %v959_v8 = vpack.c.bf16 %v658_v10, %v650_v15  ;;  %v663_v9 = vpop.permute.xlu1 %662  ;;  %v957_v17 = vpack.c.bf16 %v659_v11, %v651_v7 }
 0x3fa   : > { %v664_v18 = vsel %vm299_vm4, %v661_v16, %v663_v9  ;;  %v665_v20 = vsel %vm299_vm4, %v663_v9, %v661_v16 }
 0x3fb   : > { %v666_v21 = vmul.f32 %v664_v18, %v1555_v43  ;;  %v667_v33 = vmul.f32 %v665_v20, %v1558_v44  ;;  %958 = vmatprep.subr.bf16.mxu0 %v957_v17 }
 0x3fc   : > { %v669_v34 = vpop.permute.xlu0 %668  ;;  %960 = vmatpush1.bf16.msra.mxu0 %v959_v8 }
 0x3fd   : > { %v963_v35 = vpack.c.bf16 %v666_v21, %v1700_v45  ;;  %v671_v36 = vpop.permute.xlu1 %670  ;;  %v961_v23 = vpack.c.bf16 %v667_v33, %v625_v46 }
 0x3fe   : > { %v672_v24 = vsel %vm316_vm5, %v669_v34, %v671_v36  ;;  %v673_v25 = vsel %vm316_vm5, %v671_v36, %v669_v34 }
 0x3ff   : > { %962 = vmatprep.subr.bf16.mxu0 %v961_v23  ;;  %v674_v28 = vmul.f32 %v672_v24, %v1576_v63  ;;  %v675_v29 = vmul.f32 %v673_v25, %v1579_v3 }
 0x400   : > { %v677_v26 = vpop.permute.xlu0 %676  ;;  %964 = vmatpush1.bf16.msra.mxu0 %v963_v35 }
 0x401   : > { %v679_v27 = vpop.permute.xlu1 %678 }
 0x402   : > { %v680_v43 = vsel %vm333_vm6, %v677_v26, %v679_v27  ;;  %v681_v44 = vsel %vm333_vm6, %v679_v27, %v677_v26 }
 0x403   : > { %v682_v30 = vmul.f32 %v680_v43, %v1583_v4  ;;  %v683_v31 = vmul.f32 %v681_v44, %v1586_v6  ;;  %v627_v6 = vld [vmem:[#allocation5 + $0x10] sm:$0xff] }
 0x404   : > { %v685_v32 = vpop.permute.xlu0 %684 }
 0x405   : > { %v967_v37 = vpack.c.bf16 %v682_v30, %v674_v28  ;;  %v687_v38 = vpop.permute.xlu1 %686  ;;  %v965_v39 = vpack.c.bf16 %v683_v31, %v675_v29 }
 0x406   : > { %v689_v40 = vsel %vm350_vm7, %v687_v38, %v685_v32  ;;  %v688_v63 = vsel %vm350_vm7, %v685_v32, %v687_v38 }
 0x407   : > { %v691_v3 = vmul.f32 %v1601_v19, %v689_v40  ;;  %966 = vmatprep.subr.bf16.mxu0 %v965_v39  ;;  %v690_v4 = vmul.f32 %v1603_v22, %v688_v63 }
 0x408   : > { %968 = vmatpush1.bf16.msra.mxu0 %v967_v37 }
 0x409   : > { %711 = vmatprep.subr.mxu0 %v691_v3 }
 0x40c   : > { %712 = vmatpush1.msra.mxu0 %v690_v4 }
 0x40d   : > { %913 = vmatmul.mubr.msk.f32.vlgmr.msra.gmra.mrb[2].mxu0 %vm363_vm8, %v627_v6 }
 0x4e0   : > { %v761_v45 = vpop.f32.mrb[2].mxu0 }
 0x4e1   : > { %v768_v46 = vmul.f32 0.044715, %v761_v45  ;;  %v763_v5 = vpop.f32.mrb[3].mxu0  ;;  %v766_v55 = vmul.f32 0.5, %v761_v45 }
 0x4e2   : > { %v769_v47 = vmul.f32 0.044715, %v763_v5  ;;  %v767_v57 = vmul.f32 0.5, %v763_v5 }
 0x4e3   : > { %v770_v19 = vmul.f32 %v768_v46, %v761_v45 }
 0x4e4   : > { %v771_v48 = vmul.f32 %v769_v47, %v763_v5 }
 0x4e5   : > { %v772_v49 = vmul.f32 %v770_v19, %v761_v45 }
 0x4e6   : > { %v773_v2 = vmul.f32 %v771_v48, %v763_v5 }
 0x4e7   : > { %v774_v50 = vadd.f32 %v772_v49, %v761_v45 }
 0x4e8   : > { %v775_v22 = vadd.f32 %v773_v2, %v763_v5 }
 0x4e9   : > { %v776_v51 = vmul.f32 0.7978846, %v774_v50 }
 0x4ea   : > { %v777_v52 = vmul.f32 0.7978846, %v775_v22 }
 0x4eb   : > { %1058 = vtanh.f32 %v776_v51 }
 0x4ec   : > { %1060 = vtanh.f32 %v777_v52 }
 0x4f5   : > { %v1059_v53 = vpop.eup %1058 }
 0x4f6   : > { %v1061_v54 = vpop.eup %1060  ;;  %v780_v56 = vadd.f32 1.0, %v1059_v53 }
 0x4f7   : > { %v781_v58 = vadd.f32 1.0, %v1061_v54 }
 0x4f8   : > { %v782_v59 = vmul.f32 %v780_v56, %v766_v55 }
 0x4f9   : > { %v783_v60 = vmul.f32 %v781_v58, %v767_v57 }
 0x4fa   : > { %784 = vst [vmem:[%s1617_s11 + $0x20] sm:$0xff] %v782_v59 }
 0x4fb   : > { %785 = vst [vmem:[%s1617_s11 + $0x28] sm:$0xff] %v783_v60 }
 0x4fc   : > { %1161 = shalt.err (!%p1158_p2)
}
 0x4fd   : > { %s1162_s18 = scalar_lea.hbm %s1786_s26, 1024  ;;  %s1166_s27 = scalar_lea.hbm %s1838_s3, 2048 }
 0x4fe   : > { %p1163_p13 = scmp.ne.s32.totalorder %s1786_s26, %s1162_s18  ;;  %p1167_p4 = scmp.lt.u32.totalorder %s1786_s26, %s1838_s3 }
 0x4ff   : > { %p1168_p7 = scmp.lt.u32.totalorder %s1166_s27, %s1162_s18  ;;  %p1170_p11 = scmp.lt.u32.totalorder %s1162_s18, %s1786_s26 }
 0x500   : > { %p1164_p6 = pnand %p1163_p13, %p1852_p0 }
 0x501   : > { %p1169_p8 = por %p1168_p7, %p1167_p4 }
 0x502   : > { %p1165_p10 = pneg %p1164_p6 }
 0x503   : > { %p1171_p1 = por %p1170_p11, %p1169_p8 }
 0x505   : > { %p1172_p3 = pnand %p1171_p1, %p1165_p10 }
 0x507   : > { %1175 = shalt.err (!%p1172_p3)
}
 0x508   : > { %s1237_s11 = smov 256  }
 0x509   : > { %979 = dma.vmem_to_hbm [thread:$0]  (%p1852_p0), %s1788_s10, 1024, %s1786_s26, %s791_s16, %s1237_s11, %s1237_s11, %s1227_s20  }
 0x50a PF: > { %s819_s25 = sand.u32 1, %s1206_s12   ;;  %p1853_p5 = scmp.ne.s32.totalorder %s1843_s19, 0 }
 0x50b   : > { %p1854_p9 = scmp.ge.s32.totalorder %s1218_s15, 2  ;;  %s820_s17 = scalar_lea.sflag [#allocation4], %s819_s25 }
 0x50d   : > { %p993_p12 = pnand %p1854_p9, %p1853_p5 }
 0x50f   : > { %1201 = dma.done.wait (!%p993_p12), %s820_s17, 1024  }
 0x510   : > { %1203 = vsyncadd (!%p993_p12), %s820_s17, 4294966272  ;;  %p17_p2 = scmp.ge.s32.totalorder %s1371_s6, 4   ;;  %s1855_s12 = smov %s1210_s13 }
 0x511   : > { %s1856_s13 = smov %s1214_s14  ;;  %s1857_s14 = smov %s1380_s9 }
 0x512   : > { %s1858_s15 = smov %s1371_s6  ;;  %19 = sbr.rel (!%p17_p2) target bundleno = 6 (0x6), region = 87 }
 0x519   :  { %825 = vsyncpa [#allocation3], 1 }
 0x51a   :  { %827 = vsyncpa [#allocation3 + $0x1], 1 }
 0x51b   :  { %828 = vsyncpa [#allocation6], 1 }
 0x51c   :  { %829 = vsyncpa [#allocation4], 1 }
 0x51d   :  { %831 = vsyncpa [#allocation4 + $0x1], 1 }

</bundles_post_ra>
